<compile_context>
chip_gen: v5e
topology: v5e:2x2
jax: 0.10.0
libtpu: 0.0.40
codegen_flags: <defaults>
</compile_context>

<pallas_src>
import math

import jax
import jax.numpy as jnp
from jax.experimental import pallas as pl
from jax.experimental.pallas import tpu as pltpu


_HID = 128  # hidden width of every Dense block (fixed in the PyTorch module)


def _gelu(x):
    # GeLU exactly as written in the PyTorch module (tanh approximation).
    return 0.5 * x * (1.0 + jnp.tanh(x * 0.7978845608 * (1.0 + 0.044715 * x * x)))


def _full_fusion_kernel(x_ref, a_ref,
                        wxc_ref, wac_ref, wm_ref, b1_ref,
                        vw_ref, bf_ref, vf_ref, cf_ref,
                        o_ref):
    """One (rt, H) row tile of the fused FullFusion forward.

    x_ref, a_ref : (rt, H)
    wxc_ref : (H, 384)   wac_ref : (H, 256)   wm_ref : (H, 128)
    b1_ref  : (1, 384)   vw_ref  : (384, 128) bf_ref : (1, 128)
    vf_ref  : (128, H)   cf_ref  : (1, H)
    """
    x = x_ref[...]
    a = a_ref[...]
    m = x * a  # computed at its single point of use

    # Pre-activations of fusion1|fusion2|fusion3, concatenated along lanes:
    #   pre = x@[Wx0|Wx1+Wa1|Wx2] + [a@Wa0 | -a@Wa1 | (x*a)@Wa2] + [b0|b1|b2]
    pre = (
        jnp.dot(x, wxc_ref[...], preferred_element_type=jnp.float32)
        + jnp.concatenate(
            [jnp.dot(a, wac_ref[...], preferred_element_type=jnp.float32),
             jnp.dot(m, wm_ref[...], preferred_element_type=jnp.float32)],
            axis=-1)
        + b1_ref[...]
    )
    h = _gelu(pre).astype(x.dtype)                       # (rt, 384)

    # Folded fusion-layer pre-activation: cat(y1,y2,y3) @ WF + BF
    acc = jnp.dot(h, vw_ref[...], preferred_element_type=jnp.float32) + bf_ref[...]
    hf = _gelu(acc).astype(x.dtype)                      # (rt, 128)

    out = jnp.dot(hf, vf_ref[...], preferred_element_type=jnp.float32) + cf_ref[...]
    o_ref[...] = out.astype(o_ref.dtype)
    # TODO(synk): F.dropout with p > 0 in training mode is not implemented
    # (reference config uses dropout_rate = 0.0 -> identity; the weight
    # folding above is only valid in that regime).


def fold_fullfusion_params(W, B, V, C, WF, BF, VF, CF, *, dtype=jnp.float32):
    """Fold PyTorch-layout weights into the kernel's 5-matmul form.

    W[i]: (2H, 128)  B[i]: (128,)  V[i]: (128, H)  C[i]: (H,)
    WF:   (3H, 128)  BF:   (128,)  VF:   (128, H)  CF:   (H,)
    Only valid for dropout_rate == 0.
    """
    H = V[0].shape[1]
    Wx = [w[:H].astype(jnp.float32) for w in W]
    Wa = [w[H:].astype(jnp.float32) for w in W]
    WFs = [WF[i * H:(i + 1) * H].astype(jnp.float32) for i in range(3)]

    wxc = jnp.concatenate([Wx[0], Wx[1] + Wa[1], Wx[2]], axis=1)       # (H, 384)
    wac = jnp.concatenate([Wa[0], -Wa[1]], axis=1)                     # (H, 256)
    wm = Wa[2]                                                         # (H, 128)
    b1c = jnp.concatenate([B[0], B[1], B[2]]).reshape(1, 3 * _HID).astype(jnp.float32)
    vw = jnp.concatenate(
        [V[i].astype(jnp.float32) @ WFs[i] for i in range(3)], axis=0)  # (384, 128)
    bfold = (BF.astype(jnp.float32)
             + sum(C[i].astype(jnp.float32) @ WFs[i] for i in range(3))).reshape(1, _HID)

    return dict(
        wxc=wxc.astype(dtype), wac=wac.astype(dtype), wm=wm.astype(dtype),
        b1=b1c,                                   # biases stay f32
        vw=vw.astype(dtype), bf=bfold,
        vf=VF.astype(dtype), cf=CF.reshape(1, H).astype(jnp.float32),
    )


def _round_up(n, m):
    return ((n + m - 1) // m) * m


def full_fusion(x, align, folded, *, row_tile=512):
    """FullFusion forward. x, align: (..., H). folded: fold_fullfusion_params output."""
    assert x.shape == align.shape, "x and align must have the same shape"
    orig_shape = x.shape
    H = orig_shape[-1]
    rows = math.prod(orig_shape[:-1]) if len(orig_shape) > 1 else 1

    x2 = x.reshape(rows, H)
    a2 = align.reshape(rows, H)

    itemsize = jnp.dtype(x.dtype).itemsize
    sub = max(8, 32 // itemsize)              # sublane packing: 8 f32, 16 bf16
    if rows > row_tile:
        rt = row_tile                         # large tile amortizes ~0.35us/step
    else:
        # Small row counts: aim for >= 2 grid steps so 2-TC chips (v7x) can
        # shard the "parallel" axis; otherwise use a single full-extent block.
        half = _round_up(-(-rows // 2), sub)
        rt = half if half < rows else rows
    n_tiles = pl.cdiv(rows, rt)               # ragged last block is masked

    wxc, wac, wm = folded["wxc"], folded["wac"], folded["wm"]
    b1, vw, bf = folded["b1"], folded["vw"], folded["bf"]
    vf, cf = folded["vf"], folded["cf"]

    # Scoped-VMEM budget from the actual footprint (double-buffered I/O tiles
    # + weights + f32 activation slabs), clamped to [32 MiB, 64 MiB].
    w_bytes = sum(int(t.size) * t.dtype.itemsize
                  for t in (wxc, wac, wm, b1, vw, bf, vf, cf))
    tile_bytes = 3 * rt * H * itemsize
    act_bytes = rt * (2 * 3 * _HID + 2 * _HID + 2 * H) * 4
    est = 2 * (w_bytes + tile_bytes) + act_bytes + (8 << 20)
    vmem_limit = int(min(max(est, 32 << 20), 64 << 20))

    row_map = lambda i: (i, 0)
    const = lambda i: (0, 0)

    out = pl.pallas_call(
        _full_fusion_kernel,
        out_shape=jax.ShapeDtypeStruct((rows, H), x.dtype),
        grid_spec=pltpu.PrefetchScalarGridSpec(
            num_scalar_prefetch=0,
            grid=(n_tiles,),
            in_specs=[
                pl.BlockSpec((rt, H), row_map),       # x tile
                pl.BlockSpec((rt, H), row_map),       # align tile
                pl.BlockSpec(wxc.shape, const),       # (H, 384)
                pl.BlockSpec(wac.shape, const),       # (H, 256)
                pl.BlockSpec(wm.shape, const),        # (H, 128)
                pl.BlockSpec(b1.shape, const),        # (1, 384)
                pl.BlockSpec(vw.shape, const),        # (384, 128)
                pl.BlockSpec(bf.shape, const),        # (1, 128)
                pl.BlockSpec(vf.shape, const),        # (128, H)
                pl.BlockSpec(cf.shape, const),        # (1, H)
            ],
            out_specs=pl.BlockSpec((rt, H), row_map),
        ),
        compiler_params=pltpu.CompilerParams(
            dimension_semantics=("parallel",),
            vmem_limit_bytes=vmem_limit,
        ),
    )(x2, a2, wxc, wac, wm, b1, vw, bf, vf, cf)

    return out.reshape(orig_shape)


if __name__ == "__main__":
    key = jax.random.PRNGKey(0)
    batch, seq, hidden = 2, 8, 32
    H, HID = hidden, _HID

    ks = jax.random.split(key, 16)

    def xavier(k, shape):
        fan_in, fan_out = shape
        bound = math.sqrt(6.0 / (fan_in + fan_out))
        return jax.random.uniform(k, shape, jnp.float32, -bound, bound)

    def bias(k, fan_in, n):
        bound = 1.0 / math.sqrt(fan_in)
        return jax.random.uniform(k, (n,), jnp.float32, -bound, bound)

    # fusion1/2/3: Linear(2H -> 128) + GeLU + Linear(128 -> H)
    W = [xavier(ks[i], (2 * H, HID)) for i in range(3)]
    B = [bias(ks[3 + i], 2 * H, HID) for i in range(3)]
    V = [xavier(ks[6 + i], (HID, H)) for i in range(3)]
    C = [bias(ks[9 + i], HID, H) for i in range(3)]
    # fusion: Linear(3H -> 128) + GeLU + Linear(128 -> H)
    WF = xavier(ks[12], (3 * H, HID))
    BF = bias(ks[13], 3 * H, HID)
    VF = xavier(ks[14], (HID, H))
    CF = bias(ks[15], HID, H)

    x = jax.random.normal(jax.random.fold_in(key, 100), (batch, seq, H), jnp.float32)
    align = jax.random.normal(jax.random.fold_in(key, 200), (batch, seq, H), jnp.float32)

    folded = fold_fullfusion_params(W, B, V, C, WF, BF, VF, CF, dtype=x.dtype)
    y = full_fusion(x, align, folded)
    jax.block_until_ready(y)

    # Pure-JAX reference matching the PyTorch module (dropout_rate=0.0 -> identity).
    def dense(t, w1, b1_, w2, b2_):
        return _gelu(t @ w1 + b1_) @ w2 + b2_

    x1 = dense(jnp.concatenate([x, align], -1), W[0], B[0], V[0], C[0])
    x2 = dense(jnp.concatenate([x, x - align], -1), W[1], B[1], V[1], C[1])
    x3 = dense(jnp.concatenate([x, x * align], -1), W[2], B[2], V[2], C[2])
    ref = dense(jnp.concatenate([x1, x2, x3], -1), WF, BF, VF, CF)

    err = float(jnp.max(jnp.abs(y - ref)))
    assert jnp.allclose(y, ref, atol=5e-4, rtol=5e-4), f"max abs err {err}"
    print("KERNEL_OK")
</pallas_src>

<mosaic_0001>
module attributes {stable_mosaic.version = 11 : i64} {
  func.func @_full_fusion_kernel(%arg0: i32, %arg1: memref<8x32xf32, #tpu.memory_space<vmem>>, %arg2: memref<8x32xf32, #tpu.memory_space<vmem>>, %arg3: memref<32x384xf32, #tpu.memory_space<vmem>>, %arg4: memref<32x256xf32, #tpu.memory_space<vmem>>, %arg5: memref<32x128xf32, #tpu.memory_space<vmem>>, %arg6: memref<1x384xf32, #tpu.memory_space<vmem>>, %arg7: memref<384x128xf32, #tpu.memory_space<vmem>>, %arg8: memref<1x128xf32, #tpu.memory_space<vmem>>, %arg9: memref<128x32xf32, #tpu.memory_space<vmem>>, %arg10: memref<1x32xf32, #tpu.memory_space<vmem>>, %arg11: memref<8x32xf32, #tpu.memory_space<vmem>>) attributes {dimension_semantics = [#tpu.dimension_semantics<parallel>], iteration_bounds = array<i64: 2>, scalar_prefetch = 0 : i64, scratch_operands = 0 : i64, tpu.core_type = #tpu.core_type<tc>, window_params = [{transform_indices = @transform_0, window_bounds = array<i64: 8, 32>}, {transform_indices = @transform_1, window_bounds = array<i64: 8, 32>}, {pipeline_mode = #tpu.pipeline_mode<synchronous>, transform_indices = @transform_2, window_bounds = array<i64: 32, 384>}, {pipeline_mode = #tpu.pipeline_mode<synchronous>, transform_indices = @transform_3, window_bounds = array<i64: 32, 256>}, {pipeline_mode = #tpu.pipeline_mode<synchronous>, transform_indices = @transform_4, window_bounds = array<i64: 32, 128>}, {pipeline_mode = #tpu.pipeline_mode<synchronous>, transform_indices = @transform_5, window_bounds = array<i64: 1, 384>}, {pipeline_mode = #tpu.pipeline_mode<synchronous>, transform_indices = @transform_6, window_bounds = array<i64: 384, 128>}, {pipeline_mode = #tpu.pipeline_mode<synchronous>, transform_indices = @transform_7, window_bounds = array<i64: 1, 128>}, {pipeline_mode = #tpu.pipeline_mode<synchronous>, transform_indices = @transform_8, window_bounds = array<i64: 128, 32>}, {pipeline_mode = #tpu.pipeline_mode<synchronous>, transform_indices = @transform_9, window_bounds = array<i64: 1, 32>}, {transform_indices = @transform_10, window_bounds = array<i64: 8, 32>}]} {
    %c0 = arith.constant 0 : index
    %c0_0 = arith.constant 0 : index
    %0 = vector.load %arg1[%c0, %c0_0] : memref<8x32xf32, #tpu.memory_space<vmem>>, vector<8x32xf32>
    %c0_1 = arith.constant 0 : index
    %c0_2 = arith.constant 0 : index
    %1 = vector.load %arg2[%c0_1, %c0_2] : memref<8x32xf32, #tpu.memory_space<vmem>>, vector<8x32xf32>
    %2 = arith.mulf %0, %1 : vector<8x32xf32>
    %c0_3 = arith.constant 0 : index
    %c0_4 = arith.constant 0 : index
    %3 = vector.load %arg3[%c0_3, %c0_4] : memref<32x384xf32, #tpu.memory_space<vmem>>, vector<32x384xf32>
    %cst = arith.constant dense<0.000000e+00> : vector<8x384xf32>
    %4 = tpu.matmul %0, %3, %cst {dimension_numbers = #tpu.dot_dimension_numbers<[1], [0], [0], [1], [0, 0, 1, 1], [], []>} : vector<8x32xf32>, vector<32x384xf32>, vector<8x384xf32> -> vector<8x384xf32>
    %c0_5 = arith.constant 0 : index
    %c0_6 = arith.constant 0 : index
    %5 = vector.load %arg4[%c0_5, %c0_6] : memref<32x256xf32, #tpu.memory_space<vmem>>, vector<32x256xf32>
    %cst_7 = arith.constant dense<0.000000e+00> : vector<8x256xf32>
    %6 = tpu.matmul %1, %5, %cst_7 {dimension_numbers = #tpu.dot_dimension_numbers<[1], [0], [0], [1], [0, 0, 1, 1], [], []>} : vector<8x32xf32>, vector<32x256xf32>, vector<8x256xf32> -> vector<8x256xf32>
    %c0_8 = arith.constant 0 : index
    %c0_9 = arith.constant 0 : index
    %7 = vector.load %arg5[%c0_8, %c0_9] : memref<32x128xf32, #tpu.memory_space<vmem>>, vector<32x128xf32>
    %cst_10 = arith.constant dense<0.000000e+00> : vector<8x128xf32>
    %8 = tpu.matmul %2, %7, %cst_10 {dimension_numbers = #tpu.dot_dimension_numbers<[1], [0], [0], [1], [0, 0, 1, 1], [], []>} : vector<8x32xf32>, vector<32x128xf32>, vector<8x128xf32> -> vector<8x128xf32>
    %9 = tpu.concatenate %6, %8 in 1 : vector<8x256xf32>, vector<8x128xf32> -> vector<8x384xf32>
    %10 = arith.addf %4, %9 : vector<8x384xf32>
    %c0_11 = arith.constant 0 : index
    %c0_12 = arith.constant 0 : index
    %11 = vector.load %arg6[%c0_11, %c0_12] : memref<1x384xf32, #tpu.memory_space<vmem>>, vector<1x384xf32>
    %12 = vector.broadcast %11 : vector<1x384xf32> to vector<8x384xf32>
    %13 = arith.addf %10, %12 : vector<8x384xf32>
    %cst_13 = arith.constant 5.000000e-01 : f32
    %14 = vector.broadcast %cst_13 : f32 to vector<8x384xf32>
    %15 = arith.mulf %14, %13 : vector<8x384xf32>
    %cst_14 = arith.constant 0.797884583 : f32
    %16 = vector.broadcast %cst_14 : f32 to vector<8x384xf32>
    %17 = arith.mulf %13, %16 : vector<8x384xf32>
    %cst_15 = arith.constant 4.471500e-02 : f32
    %18 = vector.broadcast %cst_15 : f32 to vector<8x384xf32>
    %19 = arith.mulf %18, %13 : vector<8x384xf32>
    %20 = arith.mulf %19, %13 : vector<8x384xf32>
    %cst_16 = arith.constant 1.000000e+00 : f32
    %21 = vector.broadcast %cst_16 : f32 to vector<8x384xf32>
    %22 = arith.addf %21, %20 : vector<8x384xf32>
    %23 = arith.mulf %17, %22 : vector<8x384xf32>
    %24 = math.tanh %23 : vector<8x384xf32>
    %cst_17 = arith.constant 1.000000e+00 : f32
    %25 = vector.broadcast %cst_17 : f32 to vector<8x384xf32>
    %26 = arith.addf %25, %24 : vector<8x384xf32>
    %27 = arith.mulf %15, %26 : vector<8x384xf32>
    %c0_18 = arith.constant 0 : index
    %c0_19 = arith.constant 0 : index
    %28 = vector.load %arg7[%c0_18, %c0_19] : memref<384x128xf32, #tpu.memory_space<vmem>>, vector<384x128xf32>
    %cst_20 = arith.constant dense<0.000000e+00> : vector<8x128xf32>
    %29 = tpu.matmul %27, %28, %cst_20 {dimension_numbers = #tpu.dot_dimension_numbers<[1], [0], [0], [1], [0, 0, 1, 1], [], []>} : vector<8x384xf32>, vector<384x128xf32>, vector<8x128xf32> -> vector<8x128xf32>
    %c0_21 = arith.constant 0 : index
    %c0_22 = arith.constant 0 : index
    %30 = vector.load %arg8[%c0_21, %c0_22] : memref<1x128xf32, #tpu.memory_space<vmem>>, vector<1x128xf32>
    %31 = vector.broadcast %30 : vector<1x128xf32> to vector<8x128xf32>
    %32 = arith.addf %29, %31 : vector<8x128xf32>
    %cst_23 = arith.constant 5.000000e-01 : f32
    %33 = vector.broadcast %cst_23 : f32 to vector<8x128xf32>
    %34 = arith.mulf %33, %32 : vector<8x128xf32>
    %cst_24 = arith.constant 0.797884583 : f32
    %35 = vector.broadcast %cst_24 : f32 to vector<8x128xf32>
    %36 = arith.mulf %32, %35 : vector<8x128xf32>
    %cst_25 = arith.constant 4.471500e-02 : f32
    %37 = vector.broadcast %cst_25 : f32 to vector<8x128xf32>
    %38 = arith.mulf %37, %32 : vector<8x128xf32>
    %39 = arith.mulf %38, %32 : vector<8x128xf32>
    %cst_26 = arith.constant 1.000000e+00 : f32
    %40 = vector.broadcast %cst_26 : f32 to vector<8x128xf32>
    %41 = arith.addf %40, %39 : vector<8x128xf32>
    %42 = arith.mulf %36, %41 : vector<8x128xf32>
    %43 = math.tanh %42 : vector<8x128xf32>
    %cst_27 = arith.constant 1.000000e+00 : f32
    %44 = vector.broadcast %cst_27 : f32 to vector<8x128xf32>
    %45 = arith.addf %44, %43 : vector<8x128xf32>
    %46 = arith.mulf %34, %45 : vector<8x128xf32>
    %c0_28 = arith.constant 0 : index
    %c0_29 = arith.constant 0 : index
    %47 = vector.load %arg9[%c0_28, %c0_29] : memref<128x32xf32, #tpu.memory_space<vmem>>, vector<128x32xf32>
    %cst_30 = arith.constant dense<0.000000e+00> : vector<8x32xf32>
    %48 = tpu.matmul %46, %47, %cst_30 {dimension_numbers = #tpu.dot_dimension_numbers<[1], [0], [0], [1], [0, 0, 1, 1], [], []>} : vector<8x128xf32>, vector<128x32xf32>, vector<8x32xf32> -> vector<8x32xf32>
    %c0_31 = arith.constant 0 : index
    %c0_32 = arith.constant 0 : index
    %49 = vector.load %arg10[%c0_31, %c0_32] : memref<1x32xf32, #tpu.memory_space<vmem>>, vector<1x32xf32>
    %50 = vector.broadcast %49 : vector<1x32xf32> to vector<8x32xf32>
    %51 = arith.addf %48, %50 : vector<8x32xf32>
    %c0_33 = arith.constant 0 : index
    %c0_34 = arith.constant 0 : index
    %52 = vector.load %arg11[%c0_33, %c0_34] : memref<8x32xf32, #tpu.memory_space<vmem>>, vector<8x32xf32>
    tpu.vector_store %arg11[%c0_33, %c0_34], %51 {strides = array<i32>} : memref<8x32xf32, #tpu.memory_space<vmem>>, vector<8x32xf32>,
    return
  }
  func.func @transform_0(%arg0: i32) -> (i32, i32) {
    %c0_i32 = arith.constant 0 : i32
    %c0_i32_0 = arith.constant 0 : i32
    return %arg0, %c0_i32 : i32, i32
  }
  func.func @transform_1(%arg0: i32) -> (i32, i32) {
    %c0_i32 = arith.constant 0 : i32
    %c0_i32_0 = arith.constant 0 : i32
    return %arg0, %c0_i32 : i32, i32
  }
  func.func @transform_2(%arg0: i32) -> (i32, i32) {
    %c0_i32 = arith.constant 0 : i32
    %c0_i32_0 = arith.constant 0 : i32
    %c0_i32_1 = arith.constant 0 : i32
    return %c0_i32, %c0_i32_0 : i32, i32
  }
  func.func @transform_3(%arg0: i32) -> (i32, i32) {
    %c0_i32 = arith.constant 0 : i32
    %c0_i32_0 = arith.constant 0 : i32
    %c0_i32_1 = arith.constant 0 : i32
    return %c0_i32, %c0_i32_0 : i32, i32
  }
  func.func @transform_4(%arg0: i32) -> (i32, i32) {
    %c0_i32 = arith.constant 0 : i32
    %c0_i32_0 = arith.constant 0 : i32
    %c0_i32_1 = arith.constant 0 : i32
    return %c0_i32, %c0_i32_0 : i32, i32
  }
  func.func @transform_5(%arg0: i32) -> (i32, i32) {
    %c0_i32 = arith.constant 0 : i32
    %c0_i32_0 = arith.constant 0 : i32
    %c0_i32_1 = arith.constant 0 : i32
    return %c0_i32, %c0_i32_0 : i32, i32
  }
  func.func @transform_6(%arg0: i32) -> (i32, i32) {
    %c0_i32 = arith.constant 0 : i32
    %c0_i32_0 = arith.constant 0 : i32
    %c0_i32_1 = arith.constant 0 : i32
    return %c0_i32, %c0_i32_0 : i32, i32
  }
  func.func @transform_7(%arg0: i32) -> (i32, i32) {
    %c0_i32 = arith.constant 0 : i32
    %c0_i32_0 = arith.constant 0 : i32
    %c0_i32_1 = arith.constant 0 : i32
    return %c0_i32, %c0_i32_0 : i32, i32
  }
  func.func @transform_8(%arg0: i32) -> (i32, i32) {
    %c0_i32 = arith.constant 0 : i32
    %c0_i32_0 = arith.constant 0 : i32
    %c0_i32_1 = arith.constant 0 : i32
    return %c0_i32, %c0_i32_0 : i32, i32
  }
  func.func @transform_9(%arg0: i32) -> (i32, i32) {
    %c0_i32 = arith.constant 0 : i32
    %c0_i32_0 = arith.constant 0 : i32
    %c0_i32_1 = arith.constant 0 : i32
    return %c0_i32, %c0_i32_0 : i32, i32
  }
  func.func @transform_10(%arg0: i32) -> (i32, i32) {
    %c0_i32 = arith.constant 0 : i32
    %c0_i32_0 = arith.constant 0 : i32
    return %arg0, %c0_i32 : i32, i32
  }
}

</mosaic_0001>

<bundles_post_ra>
// kernel: tpu_custom_call.1
= control target key start
LH: loop header
LB: loop body
LE: loop exit
PB: predicated region body
PF: predicated region fallthrough
CT: control target
= control target key end

     0   :  { %s1611_s0 = inlined_call_operand.hbm [shape: f32[16,32], index: 0, kind: input, shape index: {}]   ;;  %s1612_s1 = inlined_call_operand.hbm [shape: f32[16,32], index: 1, kind: input, shape index: {}]   ;;  %s1613_s2 = inlined_call_operand.vmem [shape: f32[32,384], index: 2, kind: input, shape index: {}]   ;;  %s1614_s3 = inlined_call_operand.vmem [shape: f32[32,256], index: 3, kind: input, shape index: {}]   ;;  %s1615_s4 = inlined_call_operand.hbm [shape: f32[32,128], index: 4, kind: input, shape index: {}]   ;;  %s1616_s5 = inlined_call_operand.vmem [shape: f32[1,384], index: 5, kind: input, shape index: {}]   ;;  %s1617_s6 = inlined_call_operand.hbm [shape: f32[384,128], index: 6, kind: input, shape index: {}]   ;;  %s1618_s7 = inlined_call_operand.vmem [shape: f32[1,128], index: 7, kind: input, shape index: {}]   ;;  %s1619_s8 = inlined_call_operand.vmem [shape: f32[128,32], index: 8, kind: input, shape index: {}]   ;;  %s1620_s9 = inlined_call_operand.vmem [shape: f32[1,32], index: 9, kind: input, shape index: {}]   ;;  %s1621_s10 = inlined_call_operand.hbm [shape: f32[16,32], index: 10, kind: output, shape index: {}]  }
   0x1   :  { %1628 = sst [smem:[#allocation22_spill]] %s1615_s4 }
   0x2   :  { %1629 = sst [smem:[#allocation23_spill]] %s1617_s6 }
   0x3   :  { %1630 = sst [smem:[#allocation24_spill]] %s1620_s9 }
   0x4   :  { %15 = vsyncpa [#allocation3], 0 }
   0x5   :  { %17 = vsyncpa [#allocation3 + $0x1], 0 }
   0x6   :  { %18 = vsyncpa [#allocation6], 0 }
   0x7   :  { %20 = vsyncpa [#allocation6 + $0x1], 0 }
   0x8   :  { %21 = vsyncpa [#allocation9], 0 }
   0x9   :  { %22 = vsyncpa [#allocation4], 0 }
   0xa   :  { %24 = vsyncpa [#allocation4 + $0x1], 0  ;;  %s1302_s13 = smov 0   ;;  %s1304_s14 = smov 0  }
   0xb   :  { %s1306_s15 = smov 0   ;;  %s1308_s16 = smov 0  }
   0xc LB: > { %1631 = sst [smem:[#allocation16_spill]] %s1229_s13  ;;  %s1326_s20 = sadd.s32 4294967295, %s1241_s16   ;;  %s1241_s16 = sphi %s1308_s16, %s1650_s16   ;;  %s1237_s15 = sphi %s1306_s15, %s1652_s15   ;;  %s1233_s14 = sphi %s1304_s14, %s1654_s14   ;;  %s1229_s13 = sphi %s1302_s13, %s1653_s13  }
   0xd   : > { %1632 = sst [smem:[#allocation17_spill]] %s1237_s15  ;;  %p935_p0 = scmp.ge.s32.totalorder %s1241_s16, 1 }
   0xe   : > { %1633 = sst [smem:[#allocation18_spill]] %s1241_s16  ;;  %p51_p1 = scmp.eq.s32.totalorder %s1326_s20, 0 }
   0xf   : > { %s1634_s4 = sld [smem:[#allocation22_spill]]  ;;  %p281_p2 = scmp.lt.s32.totalorder %s1241_s16, 3 }
  0x10   : > { %s1243_s22 = smov [#allocation7]   ;;  %s1636_s6 = sld [smem:[#allocation23_spill]] }
  0x11   : > { %p1331_p3 = pnand %p935_p0, %p281_p2  ;;  %s300_s23 = sshll.u32 %s1243_s22, 4  ;;  %s301_s23 = int_to_ptr.vmem [resolvable:$true] %s300_s23 }
  0x12   : > { %s1244_s27 = smov [#allocation8]   ;;  %s1245_s29 = smov 128  }
  0x13   : > { %p973_p4 = pneg %p1331_p3  ;;  %s317_s28 = sshll.u32 %s1244_s27, 4  ;;  %s318_s28 = int_to_ptr.vmem [resolvable:$true] %s317_s28 }
  0x14   : > { %s1246_s30 = smov 8   ;;  %s934_s11 = sadd.s32 4294967294, %s1241_s16  }
  0x15   : > { %s298_s19 = sshll.u32 %s1634_s4, 4  ;;  %p974_p6 = pnand %p973_p4, %p51_p1  ;;  %s299_s19 = int_to_ptr.hbm [resolvable:$true] %s298_s19 }
  0x16   : > { %s315_s26 = sshll.u32 %s1636_s6, 4  ;;  %s1345_s12 = sadd.s32 1, %s1241_s16   ;;  %s316_s26 = int_to_ptr.hbm [resolvable:$true] %s315_s26 }
  0x17   : > { %976 = dma.hbm_to_vmem [thread:$0]  (!%p974_p6), %s299_s19, 512, %s301_s23, [#allocation6], %s1245_s29, %s1245_s29, %s1246_s30  }
  0x18   : > { %979 = dma.hbm_to_vmem [thread:$0]  (!%p974_p6), %s316_s26, 6144, %s318_s28, [#allocation9], %s1245_s29, %s1245_s29, %s1246_s30  }
  0x19   : > { %1637 = sst [smem:[#allocation19_spill]] %s1345_s12  ;;  %s34_s17 = ssub.s32 %s1241_s16, %s1345_s12 }
  0x1a   : > { %s37_s18 = sadd.s32 1, %s1237_s15  ;;  %p35_p7 = scmp.eq.s32.totalorder %s34_s17, 0 }
  0x1b   : > { %p44_p8 = scmp.ne.s32.totalorder %s1237_s15, %s1233_s14  ;;  %p45_p9 = scmp.eq.s32.totalorder %s1241_s16, 0 }
  0x1c   : > { %p50_p10 = scmp.ne.s32.totalorder %s1233_s14, %s1229_s13  ;;  %p268_p13 = scmp.eq.s32.totalorder %s1326_s20, 1 }
  0x1d   : > { %s1356_s22 = scalar_select %p35_p7, %s1237_s15, %s37_s18  }
  0x1e   : > { %p1358_p11 = por %p45_p9, %p44_p8  ;;  %p1364_p12 = por %p51_p1, %p50_p10 }
  0x1f   : > { %1638 = sst [smem:[#allocation20_spill]] %s1356_s22  ;;  %p274_p0 = scmp.eq.s32.totalorder %s934_s11, 1 }
  0x20   : > { %p993_p2 = scmp.lt.s32.totalorder %s1241_s16, 2  ;;  %s340_s23 = sand.u32 1, %s1237_s15  }
  0x21   : > { %p1371_p4 = por %p268_p13, %p44_p8  ;;  %p1375_p6 = por %p274_p0, %p50_p10 }
  0x22   : > { %s1379_s27 = sshll.u32 %s340_s23, 3  ;;  %s940_s28 = sshll.u32 %s1241_s16, 3 }
  0x23   : > { %s1642_s26 = scalar_select %p1375_p6, 1, 0 }
  0x24   : > { %s348_s17 = scalar_lea.hbm %s1611_s0, %s940_s28  ;;  %s344_s18 = scalar_lea.vmem [#allocation2], %s1379_s27 }
  0x25   : > { %1643 = sst [smem:[#allocation21_spill]] %s1642_s26  ;;  %s352_s11 = sshll.u32 %s344_s18, 4  ;;  %s353_s11 = int_to_ptr.vmem [resolvable:$true] %s352_s11 }
  0x26   : > { %s350_s4 = sshll.u32 %s348_s17, 4  ;;  %p1388_p7 = pnand %p993_p2, %p1358_p11  ;;  %s351_s4 = int_to_ptr.hbm [resolvable:$true] %s350_s4 }
  0x27   : > { %s367_s12 = scalar_lea.hbm %s1612_s1, %s940_s28  ;;  %s359_s26 = sand.u32 1, %s1241_s16  }
  0x28   : > { %s341_s13 = scalar_lea.sflag [#allocation3], %s340_s23  ;;  %s1103_s29 = sshra.s32 %s351_s4, 4  ;;  %s1104_s29 = int_to_ptr.hbm [resolvable:$true] %s1103_s29 }
  0x29   : > { %s1105_s30 = scalar_lea.hbm %s1104_s29, 8  ;;  %p1107_p9 = pneg %p1388_p7 }
  0x2a   : > { %p1106_p8 = scmp.ne.s32.totalorder %s1104_s29, %s1105_s30  ;;  %s1110_s18 = scalar_lea.hbm %s1611_s0, 16 }
  0x2b   : > { %p1111_p13 = scmp.lt.s32.totalorder %s1104_s29, %s1611_s0  ;;  %p1112_p0 = scmp.lt.s32.totalorder %s1110_s18, %s1105_s30 }
  0x2c   : > { %p1108_p10 = pnand %p1107_p9, %p1106_p8 }
  0x2d   : > { %p1113_p2 = por %p1112_p0, %p1111_p13 }
  0x2e   : > { %p1109_p11 = pneg %p1108_p10 }
  0x30   : > { %p1114_p5 = pnand %p1113_p2, %p1109_p11 }
  0x32   : > { %1117 = shalt.err (!%p1114_p5)
}
  0x33   : > { %983 = dma.hbm_to_vmem [thread:$0]  (!%p1388_p7), %s351_s4, 128, %s353_s11, %s341_s13  }
  0x34   : > { %s369_s23 = sshll.u32 %s367_s12, 4  ;;  %s363_s28 = scalar_lea.vmem [#allocation5], %s1379_s27  ;;  %s370_s23 = int_to_ptr.hbm [resolvable:$true] %s369_s23 }
  0x35   : > { %s371_s16 = sshll.u32 %s363_s28, 4  ;;  %s360_s24 = scalar_lea.sflag [#allocation6], %s359_s26  ;;  %s372_s16 = int_to_ptr.vmem [resolvable:$true] %s371_s16 }
  0x36   : > { %s1133_s17 = sshra.s32 %s370_s23, 4  ;;  %s1140_s18 = scalar_lea.hbm %s1612_s1, 16  ;;  %s1134_s17 = int_to_ptr.hbm [resolvable:$true] %s1133_s17 }
  0x37   : > { %s1135_s9 = scalar_lea.hbm %s1134_s17, 8  ;;  %p1141_p5 = scmp.lt.s32.totalorder %s1134_s17, %s1612_s1 }
  0x38   : > { %p1136_p8 = scmp.ne.s32.totalorder %s1134_s17, %s1135_s9  ;;  %p1142_p13 = scmp.lt.s32.totalorder %s1140_s18, %s1135_s9 }
  0x3a   : > { %p1138_p10 = pnand %p1136_p8, %p1107_p9  ;;  %p1143_p0 = por %p1142_p13, %p1141_p5 }
  0x3c   : > { %p1139_p11 = pneg %p1138_p10 }
  0x3e   : > { %p1144_p2 = pnand %p1143_p0, %p1139_p11 }
  0x40   : > { %1147 = shalt.err (!%p1144_p2)
}
  0x41   : > { %986 = dma.hbm_to_vmem [thread:$0]  (!%p1388_p7), %s370_s23, 128, %s372_s16, %s360_s24  }
  0x42   : > { %380 = sbr.rel (%p1331_p3) target bundleno = 532 (0x214), region = 60  ;;  %s1424_s13 = sand.u32 (!%p1331_p3), 1, %s1233_s14  }
  0x43   : > { %s1427_s12 = sshll.u32 (!%p1331_p3), %s1424_s13, 3  ;;  %s383_s26 = scalar_lea.sflag (!%p1331_p3), [#allocation3], %s1424_s13 }
  0x44   : > { %s386_s9 = scalar_lea.vmem (!%p1331_p3), [#allocation2], %s1427_s12 }
  0x47   : > { %1208 = dma.done.wait (%p1364_p12), %s383_s26, 128  }
  0x48   : > { %1210 = vsyncadd (%p1364_p12), %s383_s26, 4294967168  ;;  %s392_s6 = sand.u32 1, %s1326_s20   ;;  %s396_s21 = scalar_lea.vmem [#allocation5], %s1427_s12 }
  0x49   : > { %s393_s16 = scalar_lea.sflag [#allocation6], %s392_s6 }
  0x4a   : > { %1212 = dma.done.wait (%p1364_p12), %s393_s16, 128  }
  0x4b   : > { %1214 = vsyncadd (%p1364_p12), %s393_s16, 4294967168 }
  0x4c   : > { %1216 = dma.done.wait (%p51_p1), [#allocation6], 512  }
  0x4d   : > { %1218 = vsyncadd (%p51_p1), [#allocation6], 4294966784 }
  0x4e   : > { %1220 = dma.done.wait (%p51_p1), [#allocation9], 6144  }
  0x4f   : > { %1222 = vsyncadd (%p51_p1), [#allocation9], 4294961152  ;;  %v470_v0 = vld [vmem:[%s1614_s3 + $0x30] sm:$0xff]  ;;  %v471_v1 = vld [vmem:[%s1614_s3 + $0x38] sm:$0xff]  ;;  %vm472_vm0 = vcmask 261120   ;;  %s956_s24 = sshll.u32 %s1326_s20, 3 }
  0x50   : > { %v461_v2 = vld [vmem:[%s1613_s2 + $0x48] sm:$0xff]  ;;  %488 = vmatpush.msra.mxu0 %v470_v0  ;;  %508 = vmatpush.msra.mxu1 %v471_v1  ;;  %v468_v3 = vld [vmem:[%s1614_s3 + $0x20] sm:$0xff]  ;;  %v519_v5 = vld [vmem:[#allocation7 + $0x18] sm:$0xff]  ;;  %s817_s30 = scalar_lea.hbm %s1621_s10, %s956_s24  ;;  %s448_s4 = scalar_lea.vmem [#allocation10], %s1427_s12 }
  0x51   : > { %v469_v4 = vld [vmem:[%s1614_s3 + $0x28] sm:$0xff]  ;;  %558 = vmatpush.msra.mxu3 %v461_v2  ;;  %535 = vmatpush.msra.mxu2 %v519_v5  ;;  %v458_v6 = vld [vmem:[%s1613_s2 + $0x30] sm:$0xff]  ;;  %v467_v8 = vld [vmem:[%s1614_s3 + $0x18] sm:$0xff]  ;;  %s821_s26 = sshll.u32 %s817_s30, 4  ;;  %s807_s6 = scalar_lea.sflag [#allocation4], %s1424_s13  ;;  %s822_s26 = int_to_ptr.hbm [resolvable:$true] %s821_s26 }
  0x52   : > { %v466_v7 = vld [vmem:[%s1614_s3 + $0x10] sm:$0xff]  ;;  %489 = vmatpush.msra.mxu0 %v468_v3  ;;  %509 = vmatpush.msra.mxu1 %v469_v4  ;;  %v455_v10 = vld [vmem:[%s1613_s2 + $0x18] sm:$0xff]  ;;  %v464_v11 = vld [vmem:[%s1614_s3] sm:$0xff]  ;;  %s1177_s20 = sshra.s32 %s822_s26, 4  ;;  %s1183_s12 = scalar_lea.hbm %s1621_s10, 16  ;;  %s1178_s20 = int_to_ptr.hbm [resolvable:$true] %s1177_s20 }
  0x53   : > { %v518_v9 = vld [vmem:[#allocation7 + $0x10] sm:$0xff]  ;;  %559 = vmatpush.msra.mxu3 %v458_v6  ;;  %v465_v12 = vld [vmem:[%s1614_s3 + $0x8] sm:$0xff]  ;;  %v452_v14 = vld [vmem:[%s1613_s2] sm:$0xff]  ;;  %s1179_s16 = scalar_lea.hbm %s1178_s20, 8  ;;  %p1184_p7 = scmp.lt.s32.totalorder %s1178_s20, %s1621_s10 }
  0x54   : > { %536 = vmatpush.msra.mxu2 %v518_v9  ;;  %v517_v13 = vld [vmem:[#allocation7 + $0x8] sm:$0xff]  ;;  %490 = vmatpush.msra.mxu0 %v466_v7  ;;  %v450_v15 = vld [vmem:[%s396_s21] sm:$0xff]  ;;  %v516_v18 = vld [vmem:[#allocation7] sm:$0xff]  ;;  %s1645_s21 = sld [smem:[#allocation24_spill]]  ;;  %p1180_p1 = scmp.ne.s32.totalorder %s1178_s20, %s1179_s16 }
  0x55   : > { %510 = vmatpush.msra.mxu1 %v467_v8  ;;  %v449_v16 = vld [vmem:[%s386_s9] sm:$0xff]  ;;  %560 = vmatpush.msra.mxu3 %v455_v10  ;;  %v462_v17 = vld [vmem:[%s1613_s2 + $0x50] sm:$0xff]  ;;  %v463_v20 = vld [vmem:[%s1613_s2 + $0x58] sm:$0xff]  ;;  %s819_s9 = sshll.u32 %s448_s4, 4  ;;  %p1185_p9 = scmp.lt.s32.totalorder %s1183_s12, %s1179_s16  ;;  %s820_s9 = int_to_ptr.vmem [resolvable:$true] %s819_s9 }
  0x56   : > { %537 = vmatpush.msra.mxu2 %v517_v13  ;;  %491 = vmatpush.msra.mxu0 %v464_v11  ;;  %v451_v19 = vmul.f32 %v450_v15, %v449_v16  ;;  %v459_v21 = vld [vmem:[%s1613_s2 + $0x38] sm:$0xff]  ;;  %v460_v23 = vld [vmem:[%s1613_s2 + $0x40] sm:$0xff]  ;;  %v457_v25 = vld [vmem:[%s1613_s2 + $0x28] sm:$0xff]  ;;  %p1181_p3 = pnand %p1180_p1, %p1371_p4 }
  0x57   : > { %511 = vmatpush.msra.mxu1 %v465_v12  ;;  %561 = vmatpush.msra.mxu3 %v452_v14  ;;  %v659_v22 = vld [vmem:[#allocation8 + $0x78] sm:$0xff]  ;;  %v456_v24 = vld [vmem:[%s1613_s2 + $0x20] sm:$0xff]  ;;  %v453_v26 = vld [vmem:[%s1613_s2 + $0x8] sm:$0xff]  ;;  %p1186_p8 = por %p1185_p9, %p1184_p7 }
  0x58   : > { %949 = vmatmul.msk.f32.vlgmr.msra.gmra.mxu0 %vm472_vm0, %v450_v15  ;;  %950 = vmatmul.msk.f32.vlgmr.msra.gmra.mxu1 %vm472_vm0, %v450_v15  ;;  %v454_v27 = vld [vmem:[%s1613_s2 + $0x10] sm:$0xff]  ;;  %v675_v29 = vld [vmem:[#allocation8 + $0xf8] sm:$0xff]  ;;  %v657_v31 = vld [vmem:[#allocation8 + $0x68] sm:$0xff]  ;;  %p1182_p12 = pneg %p1181_p3 }
  0x59   : > { %952 = vmatmul.msk.f32.vlgmr.msra.gmra.mxu3 %vm472_vm0, %v449_v16  ;;  %578 = vmatpush.msrb.mxu0 %v462_v17  ;;  %v658_v28 = vld [vmem:[#allocation8 + $0x70] sm:$0xff]  ;;  %v691_v30 = vld [vmem:[#allocation8 + $0x178] sm:$0xff]  ;;  %v656_v34 = vld [vmem:[#allocation8 + $0x60] sm:$0xff] }
  0x5a   : > { %538 = vmatpush.msra.mxu2 %v516_v18  ;;  %598 = vmatpush.msrb.mxu1 %v463_v20  ;;  %v674_v32 = vld [vmem:[#allocation8 + $0xf0] sm:$0xff]  ;;  %v673_v35 = vld [vmem:[#allocation8 + $0xe8] sm:$0xff]  ;;  %v655_v37 = vld [vmem:[#allocation8 + $0x58] sm:$0xff]  ;;  %p1187_p10 = pnand %p1186_p8, %p1182_p12 }
  0x5b   : > { %951 = vmatmul.msk.f32.vlgmr.msra.gmra.mxu2 %vm472_vm0, %v451_v19  ;;  %579 = vmatpush.msrb.mxu0 %v459_v21  ;;  %v690_v33 = vld [vmem:[#allocation8 + $0x170] sm:$0xff]  ;;  %v689_v36 = vld [vmem:[#allocation8 + $0x168] sm:$0xff]  ;;  %v672_v38 = vld [vmem:[#allocation8 + $0xe0] sm:$0xff] }
  0x5c   : > { %696 = vmatpush.msrb.mxu2 %v659_v22  ;;  %599 = vmatpush.msrb.mxu1 %v460_v23  ;;  %v688_v39 = vld [vmem:[#allocation8 + $0x160] sm:$0xff]  ;;  %v654_v40 = vld [vmem:[#allocation8 + $0x50] sm:$0xff]  ;;  %v671_v41 = vld [vmem:[#allocation8 + $0xd8] sm:$0xff] }
  0x5d   : > { %580 = vmatpush.msrb.mxu0 %v456_v24  ;;  %716 = vmatpush.msrb.mxu3 %v675_v29  ;;  %v687_v42 = vld [vmem:[#allocation8 + $0x158] sm:$0xff]  ;;  %v653_v43 = vld [vmem:[#allocation8 + $0x48] sm:$0xff]  ;;  %v670_v44 = vld [vmem:[#allocation8 + $0xd0] sm:$0xff] }
  0x5e   : > { %600 = vmatpush.msrb.mxu1 %v457_v25  ;;  %697 = vmatpush.msrb.mxu2 %v658_v28  ;;  %v686_v45 = vld [vmem:[#allocation8 + $0x150] sm:$0xff]  ;;  %v652_v46 = vld [vmem:[#allocation8 + $0x40] sm:$0xff]  ;;  %v669_v47 = vld [vmem:[#allocation8 + $0xc8] sm:$0xff] }
  0x5f   : > { %581 = vmatpush.msrb.mxu0 %v453_v26  ;;  %717 = vmatpush.msrb.mxu3 %v674_v32  ;;  %v685_v48 = vld [vmem:[#allocation8 + $0x148] sm:$0xff]  ;;  %v651_v49 = vld [vmem:[#allocation8 + $0x38] sm:$0xff]  ;;  %v668_v50 = vld [vmem:[#allocation8 + $0xc0] sm:$0xff] }
  0x60   : > { %601 = vmatpush.msrb.mxu1 %v454_v27  ;;  %953 = vmatmul.msk.f32.vlgmr.msrb.gmra.mxu0 %vm472_vm0, %v449_v16  ;;  %v684_v51 = vld [vmem:[#allocation8 + $0x140] sm:$0xff]  ;;  %v650_v52 = vld [vmem:[#allocation8 + $0x30] sm:$0xff]  ;;  %v667_v53 = vld [vmem:[#allocation8 + $0xb8] sm:$0xff] }
  0x61   : > { %954 = vmatmul.msk.f32.vlgmr.msrb.gmra.mxu1 %vm472_vm0, %v449_v16  ;;  %736 = vmatpush.msra.mxu0 %v691_v30  ;;  %v683_v54 = vld [vmem:[#allocation8 + $0x138] sm:$0xff]  ;;  %v649_v55 = vld [vmem:[#allocation8 + $0x28] sm:$0xff]  ;;  %v666_v56 = vld [vmem:[#allocation8 + $0xb0] sm:$0xff] }
  0x62   : > { %698 = vmatpush.msrb.mxu2 %v657_v31  ;;  %718 = vmatpush.msrb.mxu3 %v673_v35  ;;  %v682_v57 = vld [vmem:[#allocation8 + $0x130] sm:$0xff]  ;;  %v648_v58 = vld [vmem:[#allocation8 + $0x20] sm:$0xff]  ;;  %v665_v59 = vld [vmem:[#allocation8 + $0xa8] sm:$0xff] }
  0x63   : > { %737 = vmatpush.msra.mxu0 %v690_v33  ;;  %v681_v60 = vld [vmem:[#allocation8 + $0x128] sm:$0xff]  ;;  %v647_v61 = vld [vmem:[#allocation8 + $0x18] sm:$0xff]  ;;  %v664_v62 = vld [vmem:[#allocation8 + $0xa0] sm:$0xff] }
  0x64   : > { %699 = vmatpush.msrb.mxu2 %v656_v34  ;;  %719 = vmatpush.msrb.mxu3 %v672_v38  ;;  %v680_v63 = vld [vmem:[#allocation8 + $0x120] sm:$0xff]  ;;  %v646_v0 = vld [vmem:[#allocation8 + $0x10] sm:$0xff]  ;;  %v663_v1 = vld [vmem:[#allocation8 + $0x98] sm:$0xff] }
  0x65   : > { %738 = vmatpush.msra.mxu0 %v689_v36  ;;  %v679_v2 = vld [vmem:[#allocation8 + $0x118] sm:$0xff]  ;;  %v645_v3 = vld [vmem:[#allocation8 + $0x8] sm:$0xff]  ;;  %v662_v4 = vld [vmem:[#allocation8 + $0x90] sm:$0xff] }
  0x66   : > { %700 = vmatpush.msrb.mxu2 %v655_v37  ;;  %720 = vmatpush.msrb.mxu3 %v671_v41  ;;  %v678_v5 = vld [vmem:[#allocation8 + $0x110] sm:$0xff]  ;;  %v644_v6 = vld [vmem:[#allocation8] sm:$0xff]  ;;  %v661_v7 = vld [vmem:[#allocation8 + $0x88] sm:$0xff] }
  0x67   : > { %739 = vmatpush.msra.mxu0 %v688_v39  ;;  %v677_v8 = vld [vmem:[#allocation8 + $0x108] sm:$0xff]  ;;  %v660_v9 = vld [vmem:[#allocation8 + $0x80] sm:$0xff]  ;;  %v780_v13 = vld [vmem:[%s1619_s8 + $0x78] sm:$0xff] }
  0x68   : > { %701 = vmatpush.msrb.mxu2 %v654_v40  ;;  %721 = vmatpush.msrb.mxu3 %v670_v44  ;;  %v676_v10 = vld [vmem:[#allocation8 + $0x100] sm:$0xff] }
  0x69   : > { %740 = vmatpush.msra.mxu0 %v687_v42  ;;  %v606_v14 = vld [vmem:[%s1616_s5] sm:$0x7]  ;;  %785 = vmatpush.msra.mxu1 %v780_v13 }
  0x6a   : > { %702 = vmatpush.msrb.mxu2 %v653_v43  ;;  %722 = vmatpush.msrb.mxu3 %v669_v47  ;;  %v608_v15 = vperm.slane %v606_v14, 0  ;;  %v609_v18 = vperm.slane %v606_v14, 1  ;;  %v610_v21 = vperm.slane %v606_v14, 2 }
  0x6b   : > { %741 = vmatpush.msra.mxu0 %v686_v45 }
  0x6c   : > { %703 = vmatpush.msrb.mxu2 %v652_v46  ;;  %723 = vmatpush.msrb.mxu3 %v668_v50 }
  0x6d   : > { %742 = vmatpush.msra.mxu0 %v685_v48 }
  0x6e   : > { %704 = vmatpush.msrb.mxu2 %v651_v49  ;;  %724 = vmatpush.msrb.mxu3 %v667_v53 }
  0x6f   : > { %743 = vmatpush.msra.mxu0 %v684_v51 }
  0x70   : > { %705 = vmatpush.msrb.mxu2 %v650_v52  ;;  %725 = vmatpush.msrb.mxu3 %v666_v56  ;;  %v778_v56 = vld [vmem:[%s1619_s8 + $0x68] sm:$0xff] }
  0x71   : > { %744 = vmatpush.msra.mxu0 %v683_v54 }
  0x72   : > { %706 = vmatpush.msrb.mxu2 %v649_v55  ;;  %726 = vmatpush.msrb.mxu3 %v665_v59  ;;  %v779_v55 = vld [vmem:[%s1619_s8 + $0x70] sm:$0xff] }
  0x73   : > { %745 = vmatpush.msra.mxu0 %v682_v57  ;;  %786 = vmatpush.msra.mxu1 %v779_v55  ;;  %v777_v57 = vld [vmem:[%s1619_s8 + $0x60] sm:$0xff]  ;;  %v775_v59 = vld [vmem:[%s1619_s8 + $0x50] sm:$0xff] }
  0x74   : > { %707 = vmatpush.msrb.mxu2 %v648_v58  ;;  %727 = vmatpush.msrb.mxu3 %v664_v62  ;;  %v776_v58 = vld [vmem:[%s1619_s8 + $0x58] sm:$0xff] }
  0x75   : > { %746 = vmatpush.msra.mxu0 %v681_v60  ;;  %787 = vmatpush.msra.mxu1 %v778_v56  ;;  %v774_v60 = vld [vmem:[%s1619_s8 + $0x48] sm:$0xff]  ;;  %v772_v62 = vld [vmem:[%s1619_s8 + $0x38] sm:$0xff] }
  0x76   : > { %708 = vmatpush.msrb.mxu2 %v647_v61  ;;  %728 = vmatpush.msrb.mxu3 %v663_v1  ;;  %v773_v61 = vld [vmem:[%s1619_s8 + $0x40] sm:$0xff] }
  0x77   : > { %747 = vmatpush.msra.mxu0 %v680_v63  ;;  %788 = vmatpush.msra.mxu1 %v777_v57  ;;  %v771_v63 = vld [vmem:[%s1619_s8 + $0x30] sm:$0xff]  ;;  %v769_v1 = vld [vmem:[%s1619_s8 + $0x20] sm:$0xff] }
  0x78   : > { %709 = vmatpush.msrb.mxu2 %v646_v0  ;;  %729 = vmatpush.msrb.mxu3 %v662_v4  ;;  %v770_v0 = vld [vmem:[%s1619_s8 + $0x28] sm:$0xff] }
  0x79   : > { %748 = vmatpush.msra.mxu0 %v679_v2  ;;  %789 = vmatpush.msra.mxu1 %v776_v58  ;;  %v768_v2 = vld [vmem:[%s1619_s8 + $0x18] sm:$0xff]  ;;  %v766_v4 = vld [vmem:[%s1619_s8 + $0x8] sm:$0xff] }
  0x7a   : > { %710 = vmatpush.msrb.mxu2 %v645_v3  ;;  %730 = vmatpush.msrb.mxu3 %v661_v7  ;;  %v767_v3 = vld [vmem:[%s1619_s8 + $0x10] sm:$0xff] }
  0x7b   : > { %749 = vmatpush.msra.mxu0 %v678_v5  ;;  %790 = vmatpush.msra.mxu1 %v775_v59  ;;  %v765_v5 = vld [vmem:[%s1619_s8] sm:$0xff] }
  0x7c   : > { %711 = vmatpush.msrb.mxu2 %v644_v6  ;;  %731 = vmatpush.msrb.mxu3 %v660_v9  ;;  %v1033_v6 = vld [vmem:[%s1618_s7] ss:$0 sm:$0xff] }
  0x7d   : > { %750 = vmatpush.msra.mxu0 %v677_v8  ;;  %791 = vmatpush.msra.mxu1 %v774_v60 }
  0x7f   : > { %751 = vmatpush.msra.mxu0 %v676_v10  ;;  %792 = vmatpush.msra.mxu1 %v773_v61 }
  0x81   : > { %793 = vmatpush.msra.mxu1 %v772_v62 }
  0x83   : > { %794 = vmatpush.msra.mxu1 %v771_v63 }
  0x85   : > { %795 = vmatpush.msra.mxu1 %v770_v0 }
  0x87   : > { %796 = vmatpush.msra.mxu1 %v769_v1 }
  0x89   : > { %797 = vmatpush.msra.mxu1 %v768_v2 }
  0x8b   : > { %798 = vmatpush.msra.mxu1 %v767_v3 }
  0x8d   : > { %799 = vmatpush.msra.mxu1 %v766_v4 }
  0x8f   : > { %800 = vmatpush.msra.mxu1 %v765_v5 }
  0xd5   : > { %v493_v11 = vpop.f32.mrf.mxu0  ;;  %v513_v12 = vpop.f32.mrf.mxu1 }
  0xdc   : > { %v563_v16 = vpop.f32.mrf.mxu3 }
  0xdd   : > { %v564_v17 = vadd.f32 %v563_v16, %v493_v11  ;;  %v583_v20 = vpop.f32.mrf.mxu0 }
  0xde   : > { %v540_v19 = vpop.f32.mrf.mxu2  ;;  %v584_v23 = vadd.f32 %v583_v20, %v513_v12  ;;  %v603_v24 = vpop.f32.mrf.mxu1 }
  0xdf   : > { %v614_v22 = vadd.f32 %v608_v15, %v564_v17  ;;  %v604_v25 = vadd.f32 %v603_v24, %v540_v19 }
  0xe0   : > { %v615_v27 = vadd.f32 %v609_v18, %v584_v23 }
  0xe1   : > { %v623_v26 = vmul.f32 0.044715, %v614_v22  ;;  %v616_v28 = vadd.f32 %v610_v21, %v604_v25  ;;  %v620_v33 = vmul.f32 0.7978846, %v614_v22  ;;  %v617_v44 = vmul.f32 0.5, %v614_v22 }
  0xe2   : > { %v624_v30 = vmul.f32 0.044715, %v615_v27  ;;  %v621_v38 = vmul.f32 0.7978846, %v615_v27  ;;  %v618_v49 = vmul.f32 0.5, %v615_v27 }
  0xe3   : > { %v626_v29 = vmul.f32 %v623_v26, %v614_v22  ;;  %v625_v31 = vmul.f32 0.044715, %v616_v28  ;;  %v622_v35 = vmul.f32 0.7978846, %v616_v28  ;;  %v619_v51 = vmul.f32 0.5, %v616_v28 }
  0xe4   : > { %v627_v32 = vmul.f32 %v624_v30, %v615_v27  ;;  %v1034_v22 = vld [vmem:[%s1645_s21] ss:$0 sm:$0xff] }
  0xe5   : > { %v629_v34 = vadd.f32 1.0, %v626_v29  ;;  %v628_v36 = vmul.f32 %v625_v31, %v616_v28 }
  0xe6   : > { %v630_v39 = vadd.f32 1.0, %v627_v32 }
  0xe7   : > { %v632_v37 = vmul.f32 %v629_v34, %v620_v33  ;;  %v631_v40 = vadd.f32 1.0, %v628_v36 }
  0xe8   : > { %v633_v41 = vmul.f32 %v630_v39, %v621_v38 }
  0xe9   : > { %1035 = vtanh.f32 %v632_v37  ;;  %v634_v42 = vmul.f32 %v631_v40, %v622_v35 }
  0xea   : > { %1037 = vtanh.f32 %v633_v41 }
  0xeb   : > { %1039 = vtanh.f32 %v634_v42 }
  0xef   : > { %v1036_v43 = vpop.eup %1035 }
  0xf0   : > { %v638_v45 = vadd.f32 1.0, %v1036_v43  ;;  %v1038_v46 = vpop.eup %1037 }
  0xf1   : > { %v1040_v47 = vpop.eup %1039  ;;  %v639_v50 = vadd.f32 1.0, %v1038_v46 }
  0xf2   : > { %v641_v48 = vmul.f32 %v638_v45, %v617_v44  ;;  %v640_v52 = vadd.f32 1.0, %v1040_v47 }
  0xf3   : > { %v642_v53 = vmul.f32 %v639_v50, %v618_v49 }
  0xf4   : > { %712 = vmatmul.f32.vlgmr.msrb.gmra.mxu2 %v641_v48  ;;  %v643_v54 = vmul.f32 %v640_v52, %v619_v51 }
  0xf5   : > { %732 = vmatmul.f32.vlgmr.msrb.gmra.mxu3 %v642_v53 }
  0xf6   : > { %752 = vmatmul.f32.vlgmr.msra.gmra.mxu0 %v643_v54 }
 0x173   : > { %v753_v11 = vpop.f32.mrf.mxu0 }
 0x177   : > { %v713_v7 = vpop.f32.mrf.mxu2 }
 0x178   : > { %v714_v8 = vadd.f32 %v1033_v6, %v713_v7  ;;  %v733_v9 = vpop.f32.mrf.mxu3 }
 0x17a   : > { %v734_v10 = vadd.f32 %v733_v9, %v714_v8 }
 0x17c   : > { %v754_v12 = vadd.f32 %v753_v11, %v734_v10 }
 0x17e   : > { %v758_v13 = vmul.f32 0.044715, %v754_v12  ;;  %v757_v15 = vmul.f32 0.7978846, %v754_v12  ;;  %v756_v19 = vmul.f32 0.5, %v754_v12 }
 0x180   : > { %v759_v14 = vmul.f32 %v758_v13, %v754_v12 }
 0x182   : > { %v760_v16 = vadd.f32 1.0, %v759_v14 }
 0x184   : > { %v761_v17 = vmul.f32 %v760_v16, %v757_v15 }
 0x186   : > { %1041 = vtanh.f32 %v761_v17 }
 0x18c   : > { %v1042_v18 = vpop.eup %1041 }
 0x18d   : > { %v763_v20 = vadd.f32 1.0, %v1042_v18 }
 0x18f   : > { %v764_v21 = vmul.f32 %v763_v20, %v756_v19 }
 0x191   : > { %801 = vmatmul.f32.vlgmr.msra.gmra.mxu1 %v764_v21 }
 0x20e   : > { %v802_v23 = vpop.f32.mrf.mxu1 }
 0x20f   : > { %v803_v24 = vadd.f32 %v1034_v22, %v802_v23 }
 0x211   : > { %805 = vst.msk [vmem:[%s448_s4] sm:$0xff] %vm472_vm0, %v803_v24 }
 0x212   : > { %1190 = shalt.err (!%p1187_p10)
}
 0x213   : > { %971 = dma.vmem_to_hbm [thread:$0]  (%p1371_p4), %s820_s9, 128, %s822_s26, %s807_s6  }
 0x214 PF: > { %s1646_s13 = sld [smem:[#allocation16_spill]] }
 0x215   : > { %s1648_s28 = sld [smem:[#allocation18_spill]] }
 0x21a   : > { %s833_s24 = sand.u32 1, %s1646_s13  }
 0x21b   : > { %p1649_p11 = scmp.ge.s32.totalorder %s1648_s28, 2  ;;  %s834_s17 = scalar_lea.sflag [#allocation4], %s833_s24 }
 0x21d   : > { %p988_p5 = pnand %p1649_p11, %p1375_p6 }
 0x21f   : > { %p989_p13 = pneg %p988_p5 }
 0x221   : > { %1224 = dma.done.wait (%p989_p13), %s834_s17, 128  }
 0x222   : > { %1226 = vsyncadd (%p989_p13), %s834_s17, 4294967168  ;;  %s1650_s16 = sld [smem:[#allocation19_spill]]  ;;  %s1653_s13 = smov %s1233_s14 }
 0x223   : > { %s1651_s29 = sld [smem:[#allocation17_spill]] }
 0x224   : > { %s1652_s15 = sld [smem:[#allocation20_spill]] }
 0x228   : > { %p27_p0 = scmp.ge.s32.totalorder %s1650_s16, 4  }
 0x229   : > { %s1654_s14 = smov %s1651_s29 }
 0x22a   :  { %29 = sbr.rel (!%p27_p0) target bundleno = 12 (0xc), region = 126 }
 0x22f   :  { %840 = vsyncpa [#allocation3], 1 }
 0x230   :  { %842 = vsyncpa [#allocation3 + $0x1], 1 }
 0x231   :  { %843 = vsyncpa [#allocation6], 1 }
 0x232   :  { %845 = vsyncpa [#allocation6 + $0x1], 1 }
 0x233   :  { %846 = vsyncpa [#allocation9], 1 }
 0x234   :  { %847 = vsyncpa [#allocation4], 1 }
 0x235   :  { %849 = vsyncpa [#allocation4 + $0x1], 1 }

</bundles_post_ra>
